<compile_context>
chip_gen: v7x
topology: tpu7x:2x2x1
jax: 0.10.0
libtpu: 0.0.40
codegen_flags: <defaults>
</compile_context>

<pallas_src>
import jax
import jax.numpy as jnp
from jax.experimental import pallas as pl
from jax.experimental.pallas import tpu as pltpu

# ---- "config" (synthetic, matches the shapes the module's __init__ implies) ----
INPUT_DIM   = 32
HIDDEN_DIMS = [64, 64]
NUM_CLASSES = 8
BN_EPS      = 1e-5

LANE = 128   # TPU lane width; every layer's output lanes are padded to this in the slab


def _round_up(a, b):
    return (a + b - 1) // b * b


def _build_layout():
    """Static row layout of the packed parameter slab (all offsets 8-sublane aligned)."""
    n_layers = len(HIDDEN_DIMS) + 1
    in_dims = [INPUT_DIM] + [LANE] * len(HIDDEN_DIMS)   # padded contraction rows per layer
    w_rows = []
    off = 0
    for i in range(n_layers):
        k = _round_up(in_dims[i], 8)
        w_rows.append((off, k))
        off += k
    b_rows = []
    for _ in range(n_layers):
        b_rows.append(off)
        off += 8                                        # keep every bias row 8-aligned
    return tuple(w_rows), tuple(b_rows), off


# ((0, 32), (32, 128), (160, 128)), (288, 296, 304), 312
W_ROWS, B_ROWS, SLAB_ROWS = _build_layout()


def mlp_kernel(x_ref, p_ref, o_ref):
    """Fused MLP over one batch tile; all layers read from the single packed slab."""
    cdt = p_ref.dtype                     # matmul-input dtype (f32, or bf16 on v6e/v7x)
    n_layers = len(W_ROWS)
    h = x_ref[...]
    for i in range(n_layers):             # static Python loop -> fully unrolled at trace time
        off, k = W_ROWS[i]
        w = p_ref[off:off + k, :]                          # static, 8-aligned slab slices (free)
        c = p_ref[B_ROWS[i]:B_ROWS[i] + 1, :]
        z = jnp.dot(h.astype(cdt), w, preferred_element_type=jnp.float32) + c
        h = jnp.maximum(z, 0.0) if i < n_layers - 1 else z
    # Compact lane-slice store: real logits only, no padded HBM write traffic.
    o_ref[...] = h[:, :NUM_CLASSES].astype(o_ref.dtype)


def stage_classifier_forward(x, param_slab, *, block_rows=None):
    """x: (B, INPUT_DIM) -> logits (B, NUM_CLASSES) float32."""
    B, D = x.shape
    assert D == INPUT_DIM
    tb = B if block_rows is None else block_rows
    # TODO(synk): pad the batch externally if it is not a multiple of the tile size.
    assert B % tb == 0, "batch must be a multiple of block_rows"
    grid = (B // tb,)

    flops = 2 * B * sum(k * LANE for _, k in W_ROWS)
    bytes_accessed = (x.size * x.dtype.itemsize
                      + param_slab.size * param_slab.dtype.itemsize
                      + B * NUM_CLASSES * 4)
    cost = pl.CostEstimate(flops=flops, transcendentals=0, bytes_accessed=bytes_accessed)

    return pl.pallas_call(
        mlp_kernel,
        out_shape=jax.ShapeDtypeStruct((B, NUM_CLASSES), jnp.float32),
        grid=grid,
        in_specs=[
            pl.BlockSpec((tb, INPUT_DIM), lambda i: (i, 0),
                         memory_space=pltpu.MemorySpace.VMEM),
            # Constant index_map: the parameter slab is DMA'd once and stays VMEM-resident
            # across all batch tiles.
            pl.BlockSpec((SLAB_ROWS, LANE), lambda i: (0, 0),
                         memory_space=pltpu.MemorySpace.VMEM),
        ],
        out_specs=pl.BlockSpec((tb, NUM_CLASSES), lambda i: (i, 0),
                               memory_space=pltpu.MemorySpace.VMEM),
        compiler_params=pltpu.CompilerParams(
            dimension_semantics=("parallel",)),   # v7x: shard batch tiles over both TCs
        cost_estimate=cost,
    )(x, param_slab)


# ---------------------------------------------------------------------------
# Parameter construction (stand-in for the .ckpt the PyTorch module loads).
# ---------------------------------------------------------------------------
def make_raw_params(key):
    """Raw (unfolded) Linear + eval-mode BN parameters."""
    keys = jax.random.split(key, 32)
    ki = iter(keys)

    def lin(din, dout):
        w = jax.random.normal(next(ki), (din, dout), jnp.float32) * (1.0 / jnp.sqrt(din))
        b = jax.random.normal(next(ki), (1, dout), jnp.float32) * 0.1
        return w, b

    def bn(d):
        gamma = 1.0 + 0.1 * jax.random.normal(next(ki), (d,), jnp.float32)
        beta  = 0.1 * jax.random.normal(next(ki), (d,), jnp.float32)
        rmean = 0.1 * jax.random.normal(next(ki), (d,), jnp.float32)
        rvar  = jnp.abs(jax.random.normal(next(ki), (d,), jnp.float32)) + 0.5
        scale = gamma / jnp.sqrt(rvar + BN_EPS)          # fold BN (eval mode)
        shift = beta - rmean * scale
        return scale.reshape(1, d), shift.reshape(1, d)

    w0, b0 = lin(INPUT_DIM, HIDDEN_DIMS[0]);     s0, t0 = bn(HIDDEN_DIMS[0])
    w1, b1 = lin(HIDDEN_DIMS[0], HIDDEN_DIMS[1]); s1, t1 = bn(HIDDEN_DIMS[1])
    w2, b2 = lin(HIDDEN_DIMS[1], NUM_CLASSES)
    return (w0, b0, s0, t0, w1, b1, s1, t1, w2, b2)


def fold_and_pack_params(raw, dtype=jnp.float32):
    """Fold eval-mode BN into the Linears and pack everything into one lane-dense slab."""
    (w0, b0, s0, t0, w1, b1, s1, t1, w2, b2) = raw
    # relu((x @ w + b) * s + t) == relu(x @ (w * s) + (b * s + t))
    ws = [w0 * s0, w1 * s1, w2]
    cs = [b0 * s0 + t0, b1 * s1 + t1, b2]
    slab = jnp.zeros((SLAB_ROWS, LANE), jnp.float32)
    for (off, _), b_off, w, c in zip(W_ROWS, B_ROWS, ws, cs):
        k_in, k_out = w.shape
        slab = slab.at[off:off + k_in, :k_out].set(w)    # rows/cols beyond true dims stay zero
        slab = slab.at[b_off, :k_out].set(c.reshape(-1))
    return slab.astype(dtype)


def reference_forward(x, raw):
    """Pure-JAX reference with the *unfolded* parameters (matches PyTorch eval forward)."""
    (w0, b0, s0, t0, w1, b1, s1, t1, w2, b2) = raw
    h = jnp.maximum((x @ w0 + b0) * s0 + t0, 0.0)
    h = jnp.maximum((h @ w1 + b1) * s1 + t1, 0.0)
    return h @ w2 + b2


if __name__ == "__main__":
    key = jax.random.PRNGKey(0)
    kx, kp = jax.random.split(key)

    BATCH = 32
    TILE_ROWS = 16   # 2 grid steps: exercises the batch grid + resident-weight path
    x = jax.random.normal(kx, (BATCH, INPUT_DIM), jnp.float32)

    raw_params = make_raw_params(kp)
    ref = reference_forward(x, raw_params)

    # --- f32 path: exact module (eval-mode) semantics ---
    slab_f32 = fold_and_pack_params(raw_params, jnp.float32)
    out = stage_classifier_forward(x, slab_f32, block_rows=TILE_ROWS)
    out = jax.block_until_ready(out)
    assert out.shape == (BATCH, NUM_CLASSES)
    assert jnp.allclose(out, ref, atol=1e-4, rtol=1e-4), "f32 kernel mismatch vs JAX reference"

    # --- bf16 matmul-input path (v6e/v7x bf16-native MXU; f32 accumulation) ---
    slab_bf16 = fold_and_pack_params(raw_params, jnp.bfloat16)
    out_bf16 = stage_classifier_forward(x.astype(jnp.bfloat16), slab_bf16,
                                        block_rows=TILE_ROWS)
    out_bf16 = jax.block_until_ready(out_bf16)
    assert out_bf16.shape == (BATCH, NUM_CLASSES)
    assert jnp.allclose(out_bf16, ref, atol=1e-1, rtol=1e-1), "bf16 kernel mismatch vs JAX reference"

    print("KERNEL_OK")
</pallas_src>

<mosaic_0001>
module attributes {stable_mosaic.version = 11 : i64} {
  func.func @mlp_kernel(%arg0: i32, %arg1: memref<16x32xf32, #tpu.memory_space<vmem>>, %arg2: memref<312x128xf32, #tpu.memory_space<vmem>>, %arg3: memref<16x8xf32, #tpu.memory_space<vmem>>) attributes {dimension_semantics = [#tpu.dimension_semantics<parallel>], iteration_bounds = array<i64: 2>, scalar_prefetch = 0 : i64, scratch_operands = 0 : i64, tpu.core_type = #tpu.core_type<tc>, window_params = [{transform_indices = @transform_0, window_bounds = array<i64: 16, 32>}, {pipeline_mode = #tpu.pipeline_mode<synchronous>, transform_indices = @transform_1, window_bounds = array<i64: 312, 128>}, {transform_indices = @transform_2, window_bounds = array<i64: 16, 8>}]} {
    %c0 = arith.constant 0 : index
    %c0_0 = arith.constant 0 : index
    %0 = vector.load %arg1[%c0, %c0_0] : memref<16x32xf32, #tpu.memory_space<vmem>>, vector<16x32xf32>
    %c0_1 = arith.constant 0 : index
    %c0_2 = arith.constant 0 : index
    %1 = vector.load %arg2[%c0_1, %c0_2] : memref<312x128xf32, #tpu.memory_space<vmem>>, vector<32x128xf32>
    %c288 = arith.constant 288 : index
    %c0_3 = arith.constant 0 : index
    %2 = vector.load %arg2[%c288, %c0_3] : memref<312x128xf32, #tpu.memory_space<vmem>>, vector<1x128xf32>
    %cst = arith.constant dense<0.000000e+00> : vector<16x128xf32>
    %3 = tpu.matmul %0, %1, %cst {dimension_numbers = #tpu.dot_dimension_numbers<[1], [0], [0], [1], [0, 0, 1, 1], [], []>} : vector<16x32xf32>, vector<32x128xf32>, vector<16x128xf32> -> vector<16x128xf32>
    %4 = vector.broadcast %2 : vector<1x128xf32> to vector<16x128xf32>
    %5 = arith.addf %3, %4 : vector<16x128xf32>
    %cst_4 = arith.constant 0.000000e+00 : f32
    %6 = vector.broadcast %cst_4 : f32 to vector<16x128xf32>
    %7 = arith.maximumf %5, %6 : vector<16x128xf32>
    %c32 = arith.constant 32 : index
    %c0_5 = arith.constant 0 : index
    %8 = vector.load %arg2[%c32, %c0_5] : memref<312x128xf32, #tpu.memory_space<vmem>>, vector<128x128xf32>
    %c296 = arith.constant 296 : index
    %c0_6 = arith.constant 0 : index
    %9 = vector.load %arg2[%c296, %c0_6] : memref<312x128xf32, #tpu.memory_space<vmem>>, vector<1x128xf32>
    %cst_7 = arith.constant dense<0.000000e+00> : vector<16x128xf32>
    %10 = tpu.matmul %7, %8, %cst_7 {dimension_numbers = #tpu.dot_dimension_numbers<[1], [0], [0], [1], [0, 0, 1, 1], [], []>} : vector<16x128xf32>, vector<128x128xf32>, vector<16x128xf32> -> vector<16x128xf32>
    %11 = vector.broadcast %9 : vector<1x128xf32> to vector<16x128xf32>
    %12 = arith.addf %10, %11 : vector<16x128xf32>
    %cst_8 = arith.constant 0.000000e+00 : f32
    %13 = vector.broadcast %cst_8 : f32 to vector<16x128xf32>
    %14 = arith.maximumf %12, %13 : vector<16x128xf32>
    %c160 = arith.constant 160 : index
    %c0_9 = arith.constant 0 : index
    %15 = vector.load %arg2[%c160, %c0_9] : memref<312x128xf32, #tpu.memory_space<vmem>>, vector<128x128xf32>
    %c304 = arith.constant 304 : index
    %c0_10 = arith.constant 0 : index
    %16 = vector.load %arg2[%c304, %c0_10] : memref<312x128xf32, #tpu.memory_space<vmem>>, vector<1x128xf32>
    %cst_11 = arith.constant dense<0.000000e+00> : vector<16x128xf32>
    %17 = tpu.matmul %14, %15, %cst_11 {dimension_numbers = #tpu.dot_dimension_numbers<[1], [0], [0], [1], [0, 0, 1, 1], [], []>} : vector<16x128xf32>, vector<128x128xf32>, vector<16x128xf32> -> vector<16x128xf32>
    %18 = vector.broadcast %16 : vector<1x128xf32> to vector<16x128xf32>
    %19 = arith.addf %17, %18 : vector<16x128xf32>
    %20 = vector.extract_strided_slice %19 {offsets = [0, 0], sizes = [16, 8], strides = [1, 1]} : vector<16x128xf32> to vector<16x8xf32>
    %c0_12 = arith.constant 0 : index
    %c0_13 = arith.constant 0 : index
    %21 = vector.load %arg3[%c0_12, %c0_13] : memref<16x8xf32, #tpu.memory_space<vmem>>, vector<16x8xf32>
    tpu.vector_store %arg3[%c0_12, %c0_13], %20 {strides = array<i32>} : memref<16x8xf32, #tpu.memory_space<vmem>>, vector<16x8xf32>,
    return
  }
  func.func @transform_0(%arg0: i32) -> (i32, i32) {
    %c0_i32 = arith.constant 0 : i32
    %c0_i32_0 = arith.constant 0 : i32
    return %arg0, %c0_i32 : i32, i32
  }
  func.func @transform_1(%arg0: i32) -> (i32, i32) {
    %c0_i32 = arith.constant 0 : i32
    %c0_i32_0 = arith.constant 0 : i32
    %c0_i32_1 = arith.constant 0 : i32
    return %c0_i32, %c0_i32_0 : i32, i32
  }
  func.func @transform_2(%arg0: i32) -> (i32, i32) {
    %c0_i32 = arith.constant 0 : i32
    %c0_i32_0 = arith.constant 0 : i32
    return %arg0, %c0_i32 : i32, i32
  }
}

</mosaic_0001>

<bundles_post_ra>
// kernel: tpu_custom_call.1
= control target key start
LH: loop header
LB: loop body
LE: loop exit
PB: predicated region body
PF: predicated region fallthrough
CT: control target
= control target key end

     0   :  { %7 = vsyncpa [#allocation3], 0  ;;  %s1091_s0 = inlined_call_operand.hbm [shape: f32[32,32], index: 0, kind: input, shape index: {}]   ;;  %s1092_s1 = inlined_call_operand.hbm [shape: f32[312,128], index: 1, kind: input, shape index: {}]   ;;  %s1093_s2 = inlined_call_operand.vmem [shape: f32[32,8], index: 2, kind: output, shape index: {}]  }
   0x1   :  { %9 = vsyncpa [#allocation3 + $0x1], 0 }
   0x2   :  { %10 = vsyncpa [#allocation5], 0  ;;  %s935_s9 = smov 0   ;;  %s937_s10 = smov 0  }
   0x3   :  { %s939_s11 = smov 0   ;;  %s941_s12 = smov 0  }
   0x4 LB: > { %s550_s13 = sadd.s32 4294967295, %s914_s12   ;;  %p36_p0 = scmp.ne.s32.totalorder %s906_s10, %s902_s9  ;;  %s914_s12 = sphi %s941_s12, %s1109_s12   ;;  %s910_s11 = sphi %s939_s11, %s1108_s11   ;;  %s906_s10 = sphi %s937_s10, %s1107_s10   ;;  %s902_s9 = sphi %s935_s9, %s1106_s9  }
   0x5   : > { %p957_p1 = scmp.eq.s32.totalorder %s550_s13, 0  ;;  %p552_p2 = scmp.ge.s32.totalorder %s914_s12, 1 }
   0x6   : > { %p94_p3 = scmp.lt.s32.totalorder %s914_s12, 3  ;;  %s916_s17 = smov [#allocation4]  }
   0x7   : > { %s1098_s14 = scalar_select %p957_p1, 1, 0 }
   0x8   : > { %p965_p4 = por %p957_p1, %p36_p0  ;;  %p969_p5 = pnand %p552_p2, %p94_p3 }
   0x9   : > { %s106_s18 = sshll.u32 %s916_s17, 4  ;;  %s982_s20 = sadd.s32 1, %s914_s12   ;;  %s107_s18 = int_to_ptr.vmem [resolvable:$true] %s106_s18 }
   0xa   : > { %s1099_s15 = scalar_select %p965_p4, 1, 0 }
   0xb   : > { %s1100_s16 = scalar_select %p969_p5, 1, 0 }
   0xc   : > { %p772_p6 = pneg %p969_p5  ;;  %s23_s21 = sadd.s32 1, %s910_s11 }
   0xd   : > { %s20_s22 = ssub.s32 %s914_s12, %s982_s20  ;;  %s818_s25 = scalar_lea.hbm %s1092_s1, 4992 }
   0xe   : > { %p977_p7 = pnand %p772_p6, %p957_p1  ;;  %p819_p8 = scmp.ne.s32.totalorder %s1092_s1, %s818_s25 }
   0xf   : > { %p825_p12 = scmp.lt.u32.totalorder %s818_s25, %s1092_s1 }
  0x10   : > { %p820_p9 = pneg %p977_p7 }
  0x12   : > { %p821_p10 = pnand %p820_p9, %p819_p8 }
  0x14   : > { %p822_p11 = pneg %p821_p10 }
  0x16   : > { %p827_p13 = pnand %p825_p12, %p822_p11 }
  0x18   : > { %830 = shalt.err (!%p827_p13)
}
  0x19   : > { %s831_s30 = scalar_lea.vmem %s107_s18, 4992  ;;  %p839_p6 = scmp.lt.s32.totalorder %s107_s18, %s107_s18 }
  0x1a   : > { %p832_p0 = scmp.ne.s32.totalorder %s107_s18, %s831_s30  ;;  %p840_p1 = scmp.lt.s32.totalorder %s831_s30, %s831_s30 }
  0x1c   : > { %p834_p2 = pnand %p832_p0, %p820_p9  ;;  %p841_p4 = por %p840_p1, %p839_p6 }
  0x1e   : > { %p835_p3 = pneg %p834_p2 }
  0x20   : > { %p842_p5 = pnand %p841_p4, %p835_p3 }
  0x22   : > { %845 = shalt.err (!%p842_p5)
}
  0x23   : > { %s917_s3 = smov 128   ;;  %s918_s4 = smov 8  }
  0x24   : > { %775 = dma.hbm_to_vmem [thread:$0]  (!%p977_p7), %s1092_s1, 4992, %s107_s18, [#allocation5], %s917_s3, %s917_s3, %s918_s4  }
  0x25   : > { %p21_p1 = scmp.eq.s32.totalorder %s20_s22, 0  ;;  %p30_p4 = scmp.ne.s32.totalorder %s910_s11, %s906_s10 }
  0x26   : > { %p31_p5 = scmp.eq.s32.totalorder %s914_s12, 0  ;;  %p781_p8 = scmp.lt.s32.totalorder %s914_s12, 2 }
  0x27   : > { %s1011_s7 = scalar_select %p21_p1, %s910_s11, %s23_s21  }
  0x28   : > { %p32_p9 = por %p31_p5, %p30_p4  ;;  %s120_s8 = sand.u32 1, %s910_s11  }
  0x29   : > { %s555_s9 = sshll.u32 %s120_s8, 4  ;;  %s570_s17 = sshll.u32 %s914_s12, 8 }
  0x2a   : > { %s1018_s19 = scalar_lea.hbm %s1091_s0, %s570_s17  ;;  %s124_s18 = scalar_lea.vmem [#allocation2], %s555_s9 }
  0x2b   : > { %s131_s22 = sshll.u32 %s124_s18, 4  ;;  %p1022_p7 = pnand %p781_p8, %p32_p9  ;;  %s1020_s22 = int_to_ptr.vmem [resolvable:$true] %s131_s22 }
  0x2c   : > { %s1026_s25 = scalar_lea.sflag [#allocation3], %s120_s8  ;;  %s846_s26 = scalar_lea.hbm %s1018_s19, 256 }
  0x2d   : > { %p847_p10 = scmp.ne.s32.totalorder %s1018_s19, %s846_s26  ;;  %p848_p11 = pneg %p1022_p7 }
  0x2e   : > { %s851_s29 = scalar_lea.hbm %s1091_s0, 512  ;;  %p852_p0 = scmp.lt.u32.totalorder %s1018_s19, %s1091_s0 }
  0x2f   : > { %p849_p12 = pnand %p848_p11, %p847_p10  ;;  %p853_p2 = scmp.lt.u32.totalorder %s851_s29, %s846_s26 }
  0x30   : > { %p855_p6 = scmp.lt.u32.totalorder %s846_s26, %s1018_s19 }
  0x31   : > { %p850_p13 = pneg %p849_p12  ;;  %p854_p3 = por %p853_p2, %p852_p0 }
  0x33   : > { %p856_p1 = por %p855_p6, %p854_p3 }
  0x35   : > { %p857_p4 = pnand %p856_p1, %p850_p13 }
  0x37   : > { %860 = shalt.err (!%p857_p4)
}
  0x38   : > { %s861_s6 = scalar_lea.vmem %s1020_s22, 256  ;;  %s919_s8 = smov [#allocation2]  }
  0x39   : > { %p862_p5 = scmp.ne.s32.totalorder %s1020_s22, %s861_s6  ;;  %s866_s9 = sshll.u32 %s919_s8, 4  ;;  %s867_s9 = int_to_ptr.vmem [resolvable:$false] %s866_s9 }
  0x3a   : > { %s868_s17 = scalar_lea.vmem %s867_s9, 512  ;;  %p869_p10 = scmp.lt.s32.totalorder %s1020_s22, %s867_s9 }
  0x3b   : > { %p864_p8 = pnand %p862_p5, %p848_p11  ;;  %p870_p12 = scmp.lt.s32.totalorder %s868_s17, %s861_s6 }
  0x3d   : > { %p865_p9 = pneg %p864_p8  ;;  %p871_p0 = por %p870_p12, %p869_p10 }
  0x3f   : > { %p872_p2 = pnand %p871_p0, %p865_p9 }
  0x41   : > { %875 = shalt.err (!%p872_p2)
}
  0x42   : > { %779 = dma.hbm_to_vmem [thread:$0]  (!%p1022_p7), %s1018_s19, 256, %s1020_s22, %s1026_s25, %s917_s3, %s917_s3, %s918_s4  }
  0x43   : > { %p1103_p11 = scmp.ne.s32.totalorder %s1100_s16, 0 }
  0x44   : > { %s145_s23 = sand.u32 (!%p1103_p11), 1, %s906_s10   ;;  %p1104_p13 = scmp.ne.s32.totalorder (!%p1103_p11), %s1099_s15, 0 }
  0x45   : > { %143 = sbr.rel (%p1103_p11) target bundleno = 743 (0x2e7), region = 28  ;;  %s1060_s24 = sshll.u32 (!%p1103_p11), %s145_s23, 4 }
  0x46   : > { %s146_s18 = scalar_lea.sflag (!%p1103_p11), [#allocation3], %s145_s23  ;;  %s149_s26 = scalar_lea.vmem (!%p1103_p11), [#allocation2], %s1060_s24 }
  0x4c   : > { %893 = dma.done.wait (%p1104_p13), %s146_s18, 256  }
  0x4d   : > { %895 = vsyncadd (%p1104_p13), %s146_s18, 4294967040  ;;  %p1105_p3 = scmp.ne.s32.totalorder %s1098_s14, 0 }
  0x4f   : > { %897 = dma.done.wait (%p1105_p3), [#allocation5], 4992  }
  0x50   : > { %899 = vsyncadd (%p1105_p3), [#allocation5], 4294962304  ;;  %vm192_vm0 = vcmask 261120   ;;  %v183_v0 = vld [vmem:[#allocation4] sm:$0xff]  ;;  %v184_v1 = vld [vmem:[#allocation4 + $0x8] sm:$0xff]  ;;  %s561_s14 = sshll.u32 %s550_s13, 1 }
  0x51   : > { %v185_v2 = vld [vmem:[#allocation4 + $0x10] sm:$0xff]  ;;  %v694_v3 = vpack.c.bf16 %v184_v1, %v183_v0  ;;  %v186_v4 = vld [vmem:[#allocation4 + $0x18] sm:$0xff]  ;;  %v276_v7 = vld [vmem:[#allocation4 + $0x20] sm:$0xff]  ;;  %p176_p7 = scmp.lt.s32.totalorder %s561_s14, 3  ;;  %vm470_vm1 = vcmask 64512  }
  0x52   : > { %v181_v5 = vld [vmem:[%s149_s26] sm:$0xff]  ;;  %v698_v6 = vpack.c.bf16 %v186_v4, %v185_v2  ;;  %v277_v8 = vld [vmem:[#allocation4 + $0x28] sm:$0xff]  ;;  %v279_v11 = vld [vmem:[#allocation4 + $0x38] sm:$0xff] }
  0x53   : > { %621 = vmatprep.mubr.msk.f32.mxu0 %vm192_vm0, %v181_v5  ;;  %v278_v9 = vld [vmem:[#allocation4 + $0x30] sm:$0xff]  ;;  %695 = vmatprep.subr.bf16.mxu0 %v694_v3  ;;  %v702_v10 = vpack.c.bf16 %v277_v8, %v276_v7  ;;  %v280_v13 = vld [vmem:[#allocation4 + $0x40] sm:$0xff]  ;;  %v281_v14 = vld [vmem:[#allocation4 + $0x48] sm:$0xff]  ;;  %s1111_s14 = smov (!%p176_p7, %s561_s14), 3 }
  0x54   : > { %697 = vmatpush3.bf16.msra.mxu0 %v694_v3  ;;  %v706_v12 = vpack.c.bf16 %v279_v11, %v278_v9  ;;  %v710_v15 = vpack.c.bf16 %v281_v14, %v280_v13  ;;  %v182_v16 = vld [vmem:[%s149_s26 + $0x8] sm:$0xff]  ;;  %v282_v17 = vld [vmem:[#allocation4 + $0x50] sm:$0xff]  ;;  %v284_v20 = vld [vmem:[#allocation4 + $0x60] sm:$0xff]  ;;  %s562_s15 = sshll.u32 %s1111_s14, 3 }
  0x55   : > { %699 = vmatprep.subr.bf16.mxu0 %v698_v6  ;;  %703 = vmatprep.subr.bf16.mxu1 %v702_v10  ;;  %v283_v18 = vld [vmem:[#allocation4 + $0x58] sm:$0xff]  ;;  %v285_v21 = vld [vmem:[#allocation4 + $0x68] sm:$0xff]  ;;  %v286_v23 = vld [vmem:[#allocation4 + $0x70] sm:$0xff]  ;;  %s179_s4 = scalar_lea.vmem %s1093_s2, %s562_s15 }
  0x56   : > { %705 = vmatpush3.bf16.msra.mxu1 %v702_v10  ;;  %v714_v19 = vpack.c.bf16 %v283_v18, %v282_v17  ;;  %v718_v22 = vpack.c.bf16 %v285_v21, %v284_v20  ;;  %v287_v24 = vld [vmem:[#allocation4 + $0x78] sm:$0xff]  ;;  %v288_v26 = vld [vmem:[#allocation4 + $0x80] sm:$0xff]  ;;  %v289_v27 = vld [vmem:[#allocation4 + $0x88] sm:$0xff] }
  0x57   : > { %707 = vmatprep.subr.bf16.mxu1 %v706_v12  ;;  %v722_v25 = vpack.c.bf16 %v287_v24, %v286_v23  ;;  %v726_v28 = vpack.c.bf16 %v289_v27, %v288_v26  ;;  %v290_v29 = vld [vmem:[#allocation4 + $0x90] sm:$0xff]  ;;  %v291_v30 = vld [vmem:[#allocation4 + $0x98] sm:$0xff]  ;;  %v374_v32 = vld [vmem:[#allocation4 + $0xa0] sm:$0xff] }
  0x58   : > { %701 = vmatpush3.bf16.msra.mxu0 %v698_v6  ;;  %v730_v31 = vpack.c.bf16 %v291_v30, %v290_v29  ;;  %v375_v33 = vld [vmem:[#allocation4 + $0xa8] sm:$0xff]  ;;  %v376_v34 = vld [vmem:[#allocation4 + $0xb0] sm:$0xff]  ;;  %v377_v36 = vld [vmem:[#allocation4 + $0xb8] sm:$0xff] }
  0x59   : > { %v734_v35 = vpack.c.bf16 %v375_v33, %v374_v32  ;;  %v738_v37 = vpack.c.bf16 %v377_v36, %v376_v34  ;;  %v378_v38 = vld [vmem:[#allocation4 + $0xc0] sm:$0xff]  ;;  %v379_v39 = vld [vmem:[#allocation4 + $0xc8] sm:$0xff]  ;;  %v380_v41 = vld [vmem:[#allocation4 + $0xd0] sm:$0xff] }
  0x5a   : > { %709 = vmatpush3.bf16.msra.mxu1 %v706_v12  ;;  %v742_v40 = vpack.c.bf16 %v379_v39, %v378_v38  ;;  %v381_v42 = vld [vmem:[#allocation4 + $0xd8] sm:$0xff]  ;;  %v382_v44 = vld [vmem:[#allocation4 + $0xe0] sm:$0xff]  ;;  %v383_v45 = vld [vmem:[#allocation4 + $0xe8] sm:$0xff] }
  0x5b   : > { %622 = vmatmul.mubr.msk.f32.vlgmr.msra.gmra.mrb[0].mxu0 %vm192_vm0, %v182_v16  ;;  %711 = vmatprep.subr.bf16.mxu1 %v710_v15  ;;  %v746_v43 = vpack.c.bf16 %v381_v42, %v380_v41  ;;  %v750_v46 = vpack.c.bf16 %v383_v45, %v382_v44  ;;  %v384_v47 = vld [vmem:[#allocation4 + $0xf0] sm:$0xff]  ;;  %v385_v48 = vld [vmem:[#allocation4 + $0xf8] sm:$0xff]  ;;  %v386_v50 = vld [vmem:[#allocation4 + $0x100] sm:$0xff] }
  0x5c   : > { %735 = vmatprep.subr.bf16.mxu0 %v734_v35  ;;  %v754_v49 = vpack.c.bf16 %v385_v48, %v384_v47  ;;  %v387_v51 = vld [vmem:[#allocation4 + $0x108] sm:$0xff]  ;;  %v563_v53 = vld [vmem:[#allocation4 + $0x120] ss:$0 sm:$0xff]  ;;  %v388_v60 = vld [vmem:[#allocation4 + $0x110] sm:$0xff] }
  0x5d   : > { %737 = vmatpush3.bf16.msra.mxu0 %v734_v35  ;;  %v758_v52 = vpack.c.bf16 %v387_v51, %v386_v50  ;;  %v389_v61 = vld [vmem:[#allocation4 + $0x118] sm:$0xff]  ;;  %v566_v63 = vld [vmem:[#allocation4 + $0x128] ss:$0 sm:$0xff]  ;;  %v567_v6 = vld [vmem:[#allocation4 + $0x130] ss:$0 sm:$0xff] }
  0x5e   : > { %713 = vmatpush3.bf16.msra.mxu1 %v710_v15  ;;  %739 = vmatprep.subr.bf16.mxu0 %v738_v37  ;;  %v762_v62 = vpack.c.bf16 %v389_v61, %v388_v60 }
  0x5f   : > { %715 = vmatprep.subr.bf16.mxu1 %v714_v19 }
  0x61   : > { %741 = vmatpush3.bf16.msra.mxu0 %v738_v37 }
  0x62   : > { %717 = vmatpush3.bf16.msra.mxu1 %v714_v19  ;;  %743 = vmatprep.subr.bf16.mxu0 %v742_v40 }
  0x63   : > { %719 = vmatprep.subr.bf16.mxu1 %v718_v22 }
  0x65   : > { %745 = vmatpush3.bf16.msra.mxu0 %v742_v40 }
  0x66   : > { %721 = vmatpush3.bf16.msra.mxu1 %v718_v22  ;;  %747 = vmatprep.subr.bf16.mxu0 %v746_v43 }
  0x67   : > { %723 = vmatprep.subr.bf16.mxu1 %v722_v25 }
  0x69   : > { %749 = vmatpush3.bf16.msra.mxu0 %v746_v43 }
  0x6a   : > { %725 = vmatpush3.bf16.msra.mxu1 %v722_v25  ;;  %751 = vmatprep.subr.bf16.mxu0 %v750_v46 }
  0x6b   : > { %727 = vmatprep.subr.bf16.mxu1 %v726_v28 }
  0x6d   : > { %753 = vmatpush3.bf16.msra.mxu0 %v750_v46 }
  0x6e   : > { %729 = vmatpush3.bf16.msra.mxu1 %v726_v28  ;;  %755 = vmatprep.subr.bf16.mxu0 %v754_v49 }
  0x6f   : > { %731 = vmatprep.subr.bf16.mxu1 %v730_v31 }
  0x71   : > { %757 = vmatpush3.bf16.msra.mxu0 %v754_v49 }
  0x72   : > { %733 = vmatpush3.bf16.msra.mxu1 %v730_v31  ;;  %759 = vmatprep.subr.bf16.mxu0 %v758_v52 }
  0x75   : > { %761 = vmatpush3.bf16.msra.mxu0 %v758_v52 }
  0x76   : > { %763 = vmatprep.subr.bf16.mxu0 %v762_v62 }
  0x79   : > { %765 = vmatpush3.bf16.msra.mxu0 %v762_v62 }
 0x12e   : > { %v623_v54 = vpop.f32.mrb[0].mxu0 }
 0x12f   : > { %v271_v55 = vadd.f32 %v623_v54, %v563_v53  ;;  %v265_v56 = vpop.f32.mrb[1].mxu0 }
 0x130   : > { %v266_v57 = vadd.f32 %v563_v53, %v265_v56 }
 0x131   : > { %v275_v59 = vmax.f32 %v271_v55, 0.0 }
 0x132   : > { %v274_v58 = vmax.f32 %v266_v57, 0.0 }
 0x134   : > { %656 = vmatprep.mubr.f32.mxu1 %v274_v58 }
 0x135   : > { %657 = vmatmul.mubr.f32.vlgmr.msra.gmra.mrb[0].mxu1 %v275_v59 }
 0x208   : > { %v658_v0 = vpop.f32.mrb[0].mxu1 }
 0x209   : > { %v369_v1 = vadd.f32 %v658_v0, %v566_v63  ;;  %v363_v2 = vpop.f32.mrb[1].mxu1 }
 0x20a   : > { %v364_v3 = vadd.f32 %v566_v63, %v363_v2 }
 0x20b   : > { %v373_v5 = vmax.f32 %v369_v1, 0.0 }
 0x20c   : > { %v372_v4 = vmax.f32 %v364_v3, 0.0 }
 0x20e   : > { %691 = vmatprep.mubr.f32.mxu0 %v372_v4 }
 0x20f   : > { %692 = vmatmul.mubr.f32.vlgmr.msra.gmra.mrb[2].mxu0 %v373_v5 }
 0x2e2   : > { %v693_v7 = vpop.f32.mrb[2].mxu0 }
 0x2e3   : > { %v461_v8 = vpop.f32.mrb[3].mxu0  ;;  %v467_v10 = vadd.f32 %v693_v7, %v567_v6 }
 0x2e4   : > { %v462_v9 = vadd.f32 %v567_v6, %v461_v8 }
 0x2e5   : > { %472 = vst.msk [vmem:[%s179_s4 + $0x8] sm:$0xff] %vm470_vm1, %v467_v10 }
 0x2e6   : > { %471 = vst.msk [vmem:[%s179_s4] sm:$0xff] %vm470_vm1, %v462_v9 }
 0x2e7 PF: > { %p13_p6 = scmp.ge.s32.totalorder %s982_s20, 4   ;;  %s1106_s9 = smov %s906_s10 }
 0x2e8   : > { %s1107_s10 = smov %s910_s11  ;;  %s1108_s11 = smov %s1011_s7 }
 0x2e9   : > { %s1109_s12 = smov %s982_s20  ;;  %15 = sbr.rel (!%p13_p6) target bundleno = 4 (0x4), region = 72 }
 0x2f0   :  { %495 = vsyncpa [#allocation3], 1 }
 0x2f1   :  { %497 = vsyncpa [#allocation3 + $0x1], 1 }
 0x2f2   :  { %498 = vsyncpa [#allocation5], 1 }

</bundles_post_ra>
